<compile_context>
chip_gen: v5e
topology: v5e:2x2
jax: 0.10.0
libtpu: 0.0.40
codegen_flags: <defaults>
</compile_context>

<pallas_src>
import functools

import jax
import jax.numpy as jnp
from jax.experimental import pallas as pl
from jax.experimental.pallas import tpu as pltpu


def _fused_linear_relu_kernel(wb_ref, x_ref, o_ref):
    # wb_ref: (n_input + 1,) f32 in SMEM  -- [w0+w1 (n_input scalars), b0+b1]
    # x_ref : (n_input, B)   f32 in VMEM  -- batch on the lane axis (lane-dense)
    # o_ref : (1, B)         f32 in VMEM  -- lane-dense output row
    n_input = x_ref.shape[0]
    # Unrolled VPU multiply-accumulate over the (tiny, static) n_input rows:
    # scalar (SMEM) * vector (VMEM row) splat-multiplies; no MXU/XLU round-trip.
    acc = x_ref[0:1, :] * wb_ref[0]
    for k in range(1, n_input):
        acc = acc + x_ref[k:k + 1, :] * wb_ref[k]
    o_ref[...] = jnp.maximum(acc + wb_ref[n_input], 0.0)


@functools.partial(jax.jit)
def addition_network(x, w0, b0, w1, b1):
    """x: (B, n_input) f32; w*: (n_input, 1) f32; b*: (1,1) or (1,) f32 -> (B, 1) f32."""
    B, n_input = x.shape

    # Fold the two linears at parameter-prep time (weights are static):
    # ReLU(x@w0 + b0 + x@w1 + b1) == ReLU(x@(w0+w1) + (b0+b1)).
    w = (w0 + w1).reshape(n_input).astype(jnp.float32)            # (n_input,)
    b = (b0 + b1).reshape(1).astype(jnp.float32)                  # (1,)
    wb = jnp.concatenate([w, b], axis=0)                          # (n_input+1,)

    # Layout plumbing: put batch on the lane axis for a lane-dense store.
    xt = x.astype(jnp.float32).T                                  # (n_input, B)

    bytes_accessed = xt.size * 4 + B * 4 + (n_input + 1) * 4
    out_row = pl.pallas_call(
        _fused_linear_relu_kernel,
        out_shape=jax.ShapeDtypeStruct((1, B), jnp.float32),
        in_specs=[
            pl.BlockSpec(memory_space=pltpu.MemorySpace.SMEM),    # packed w|b scalars
            pl.BlockSpec(xt.shape, lambda: (0, 0)),               # x, single full block
        ],
        out_specs=pl.BlockSpec((1, B), lambda: (0, 0)),
        cost_estimate=pl.CostEstimate(
            flops=2 * B * n_input + 2 * B,   # MAC + bias/ReLU
            transcendentals=0,
            bytes_accessed=bytes_accessed,
        ),
    )(wb, xt)

    # (1, B) row-major == (B, 1) row-major: reshape, no data movement.
    return out_row.reshape(B, 1)


def reference(x, w0, b0, w1, b1):
    return jnp.maximum(x @ w0 + b0 + x @ w1 + b1, 0.0)


if __name__ == "__main__":
    n_input = 3
    batch = 8

    key = jax.random.PRNGKey(0)
    kx, k0w, k0b, k1w, k1b = jax.random.split(key, 5)

    # Deterministic parameter init (shapes from nn.Linear(n_input, 1)).
    # PyTorch stores weight as (out, in); we keep the transposed (in, out)
    # layout, which is equivalent for the folded-weight formulation.
    bound = 1.0 / jnp.sqrt(n_input)
    w0 = jax.random.uniform(k0w, (n_input, 1), jnp.float32, -bound, bound)
    b0 = jax.random.uniform(k0b, (1, 1), jnp.float32, -bound, bound)
    w1 = jax.random.uniform(k1w, (n_input, 1), jnp.float32, -bound, bound)
    b1 = jax.random.uniform(k1b, (1, 1), jnp.float32, -bound, bound)

    x = jax.random.normal(kx, (batch, n_input), jnp.float32)

    out = addition_network(x, w0, b0, w1, b1)
    out = jax.block_until_ready(out)

    ref = reference(x, w0, b0, w1, b1)
    assert out.shape == (batch, 1), out.shape
    assert jnp.allclose(out, ref, atol=1e-5, rtol=1e-5), (out, ref)

    print("KERNEL_OK")
</pallas_src>

<mosaic_0001>
module attributes {stable_mosaic.version = 11 : i64} {
  func.func @_fused_linear_relu_kernel(%arg0: memref<4xf32, #tpu.memory_space<smem>>, %arg1: memref<3x8xf32, #tpu.memory_space<vmem>>, %arg2: memref<1x8xf32, #tpu.memory_space<vmem>>) attributes {dimension_semantics = [], scalar_prefetch = 0 : i64, scratch_operands = 0 : i64, tpu.core_type = #tpu.core_type<tc>} {
    %c0 = arith.constant 0 : index
    %c0_0 = arith.constant 0 : index
    %0 = vector.load %arg1[%c0, %c0_0] : memref<3x8xf32, #tpu.memory_space<vmem>>, vector<1x8xf32>
    %c0_1 = arith.constant 0 : index
    %1 = memref.load %arg0[%c0_1] : memref<4xf32, #tpu.memory_space<smem>>
    %2 = vector.broadcast %1 : f32 to vector<1x8xf32>
    %3 = arith.mulf %0, %2 : vector<1x8xf32>
    %c1 = arith.constant 1 : index
    %c0_2 = arith.constant 0 : index
    %4 = vector.load %arg1[%c1, %c0_2] : memref<3x8xf32, #tpu.memory_space<vmem>>, vector<1x8xf32>
    %c1_3 = arith.constant 1 : index
    %5 = memref.load %arg0[%c1_3] : memref<4xf32, #tpu.memory_space<smem>>
    %6 = vector.broadcast %5 : f32 to vector<1x8xf32>
    %7 = arith.mulf %4, %6 : vector<1x8xf32>
    %8 = arith.addf %3, %7 : vector<1x8xf32>
    %c2 = arith.constant 2 : index
    %c0_4 = arith.constant 0 : index
    %9 = vector.load %arg1[%c2, %c0_4] : memref<3x8xf32, #tpu.memory_space<vmem>>, vector<1x8xf32>
    %c2_5 = arith.constant 2 : index
    %10 = memref.load %arg0[%c2_5] : memref<4xf32, #tpu.memory_space<smem>>
    %11 = vector.broadcast %10 : f32 to vector<1x8xf32>
    %12 = arith.mulf %9, %11 : vector<1x8xf32>
    %13 = arith.addf %8, %12 : vector<1x8xf32>
    %c3 = arith.constant 3 : index
    %14 = memref.load %arg0[%c3] : memref<4xf32, #tpu.memory_space<smem>>
    %15 = vector.broadcast %14 : f32 to vector<1x8xf32>
    %16 = arith.addf %13, %15 : vector<1x8xf32>
    %cst = arith.constant 0.000000e+00 : f32
    %17 = vector.broadcast %cst : f32 to vector<1x8xf32>
    %18 = arith.maximumf %16, %17 : vector<1x8xf32>
    %c0_6 = arith.constant 0 : index
    %c0_7 = arith.constant 0 : index
    %19 = vector.load %arg2[%c0_6, %c0_7] : memref<1x8xf32, #tpu.memory_space<vmem>>, vector<1x8xf32>
    tpu.vector_store %arg2[%c0_6, %c0_7], %18 {strides = array<i32>} : memref<1x8xf32, #tpu.memory_space<vmem>>, vector<1x8xf32>,
    return
  }
}

</mosaic_0001>

<bundles_post_ra>
// kernel: addition_network.1
= control target key start
LH: loop header
LB: loop body
LE: loop exit
PB: predicated region body
PF: predicated region fallthrough
CT: control target
= control target key end

     0   :  { %7 = vsyncpa [#allocation4], 0  ;;  %s139_s0 = inlined_call_operand.vmem [shape: f32[4], index: 0, kind: input, shape index: {}]   ;;  %s140_s1 = inlined_call_operand.vmem [shape: f32[3,8], index: 1, kind: input, shape index: {}]   ;;  %s141_s2 = inlined_call_operand.hbm [shape: f32[1,8], index: 2, kind: output, shape index: {}]  }
   0x1   :  { %8 = vsyncpa [#allocation3], 0  ;;  %s14_s11 = sshll.u32 %s139_s0, 4  ;;  %s107_s12 = smov [#allocation2]   ;;  %s15_s11 = int_to_ptr.vmem [resolvable:$true] %s14_s11 }
   0x2   :  { %17 = dma.vmem_to_smem %s15_s11, 16, %s107_s12, [#allocation4]  }
   0x3   :  { %103 = dma.done.wait [#allocation4], 16  }
   0x4   :  { %104 = vsyncadd [#allocation4], 4294967280 }
   0x5   :  { %24 = sfence }
   0x6   :  { %s26_s13 = sld [smem:[#allocation2]]  ;;  %v25_v0 = vld [vmem:[%s140_s1] sm:$0x1]  ;;  %v29_v1 = vld [vmem:[%s140_s1 + $0x1] sm:$0x1]  ;;  %s108_s22 = smov [#allocation5]  }
   0x7   :  { %s62_s14 = sld [smem:[#allocation2 + $0x1]]  ;;  %v34_v3 = vld [vmem:[%s140_s1 + $0x2] sm:$0x1]  ;;  %s50_s23 = sshll.u32 %s108_s22, 4  ;;  %vm43_vm0 = vcmask 57344   ;;  %s51_s23 = int_to_ptr.vmem [resolvable:$true] %s50_s23 }
   0x8   :  { %s63_s15 = sld [smem:[#allocation2 + $0x2]]  ;;  %s52_s26 = sshll.u32 %s141_s2, 4  ;;  %s53_s26 = int_to_ptr.hbm [resolvable:$true] %s52_s26 }
   0x9   :  { %s64_s16 = sld [smem:[#allocation2 + $0x3]] }
   0xc   :  { %v27_v2 = vstv %s26_s13 }
   0xd   :  { %v28_v4 = vmul.f32 %v27_v2, %v25_v0  ;;  %v31_v5 = vstv %s62_s14 }
   0xe   :  { %v32_v6 = vmul.f32 %v31_v5, %v29_v1  ;;  %v36_v7 = vstv %s63_s15 }
   0xf   :  { %v37_v8 = vmul.f32 %v36_v7, %v34_v3  ;;  %v40_v10 = vstv %s64_s16 }
  0x10   :  { %v33_v9 = vadd.f32 %v32_v6, %v28_v4 }
  0x12   :  { %v38_v11 = vadd.f32 %v37_v8, %v33_v9 }
  0x14   :  { %v41_v12 = vadd.f32 %v40_v10, %v38_v11 }
  0x16   :  { %v42_v13 = vmax.f32 %v41_v12, 0.0 }
  0x18   :  { %44 = vst.msk [vmem:[#allocation5] sm:$0x1] %vm43_vm0, %v42_v13 }
  0x19   :  { %55 = dma.vmem_to_hbm [thread:$0]  %s51_s23, 16, %s53_s26, [#allocation3]  }
  0x1a   :  { %105 = dma.done.wait [#allocation3], 16  }
  0x1b   :  { %106 = vsyncadd [#allocation3], 4294967280 }
  0x1c   :  { %60 = vsyncpa [#allocation3], 1 }
  0x1d   :  { %61 = vsyncpa [#allocation4], 1 }

</bundles_post_ra>
